<compile_context>
chip_gen: v7x
topology: tpu7x:2x2x1
jax: 0.10.0
libtpu: 0.0.40
codegen_flags: <defaults>
</compile_context>

<pallas_src>
import functools
import math

import jax
import jax.numpy as jnp
from jax.experimental import pallas as pl
from jax.experimental.pallas import tpu as pltpu

_LANE = 128     # TPU lane width (last-dim tiling unit)
_SUBLANE = 8    # f32 sublane height (second-to-last-dim tiling unit)


def _round_up(x, m):
    return ((x + m - 1) // m) * m


def _dqn_kernel(x_ref, w1_ref, b1_ref, w2_ref, b2_ref, w3_ref, b3_ref, o_ref,
                *, n_actions):
    # Three back-to-back MXU matmuls with f32 accumulation; bias-add + ReLU on
    # the VPU in f32, then cast to the weight dtype (bf16 on v6e/v7x) so the
    # next matmul runs at full MXU rate.  x arrives f32 and is cast in-kernel.
    x = x_ref[...].astype(w1_ref.dtype)
    h1 = jnp.dot(x, w1_ref[...], preferred_element_type=jnp.float32) + b1_ref[...]
    h1 = jnp.maximum(h1, 0.0).astype(w2_ref.dtype)
    h2 = jnp.dot(h1, w2_ref[...], preferred_element_type=jnp.float32) + b2_ref[...]
    h2 = jnp.maximum(h2, 0.0).astype(w3_ref.dtype)
    q = jnp.dot(h2, w3_ref[...], preferred_element_type=jnp.float32) + b3_ref[...]
    # Narrow (masked) store: only the real action columns ever reach HBM.
    o_ref[...] = q[:, :n_actions].astype(o_ref.dtype)


def prepare_params(params, compute_dtype=jnp.bfloat16):
    """One-time per-model prep (do NOT call per forward): cast weights to the
    MXU compute dtype, pad the first-layer contraction dim to the dtype's
    sublane pack and the output feature dim to the 128-lane width.  Padded Q
    columns are zero and are never stored by the kernel."""
    w1, b1, w2, b2, w3, b3 = (params[k] for k in ("w1", "b1", "w2", "b2", "w3", "b3"))
    n_obs = w1.shape[0]
    n_actions = w3.shape[1]

    pack = _SUBLANE * (4 // jnp.dtype(compute_dtype).itemsize)  # 8 for f32, 16 for bf16
    n_obs_pad = _round_up(n_obs, pack)
    n_act_pad = _round_up(n_actions, _LANE)

    if n_obs_pad != n_obs:
        w1 = jnp.pad(w1, ((0, n_obs_pad - n_obs), (0, 0)))
    if n_act_pad != n_actions:
        w3 = jnp.pad(w3, ((0, 0), (0, n_act_pad - n_actions)))
        b3 = jnp.pad(b3, ((0, 0), (0, n_act_pad - n_actions)))

    prepped = {
        "w1": w1.astype(compute_dtype), "b1": b1.astype(jnp.float32),
        "w2": w2.astype(compute_dtype), "b2": b2.astype(jnp.float32),
        "w3": w3.astype(compute_dtype), "b3": b3.astype(jnp.float32),
    }
    return prepped, n_actions


def _batch_tiling(batch, tile_b):
    """Pick (tile, padded_batch, n_tiles).  The tile is a sublane multiple and
    batch is padded only by the few rows the chosen tile needs.  When batch is
    >= 16 we force >= 2 tiles so the 'parallel' batch axis can shard across
    both TensorCores on v7x (harmless on the single-TC v5e/v6e)."""
    n_tiles = pl.cdiv(batch, max(_SUBLANE, tile_b))
    if batch >= 2 * _SUBLANE:
        n_tiles = max(n_tiles, 2)
    tb = _round_up(pl.cdiv(batch, n_tiles), _SUBLANE)
    return tb, tb * n_tiles, n_tiles


@functools.partial(jax.jit, static_argnames=("n_actions", "tile_b"))
def dqn_forward(x, prepped, *, n_actions, tile_b=2048):
    """x: [batch, n_observations] f32.  prepped: output of prepare_params."""
    w1, b1, w2, b2, w3, b3 = (prepped[k] for k in ("w1", "b1", "w2", "b2", "w3", "b3"))
    batch, n_obs = x.shape
    n_obs_pad, hidden = w1.shape
    n_act_pad = w3.shape[1]

    # Pad the (tiny) contraction dim of x to match the padded w1 rows.
    if n_obs_pad != n_obs:
        x = jnp.pad(x, ((0, 0), (0, n_obs_pad - n_obs)))

    tb, padded_batch, n_tiles = _batch_tiling(batch, tile_b)
    if padded_batch != batch:
        x = jnp.pad(x, ((0, padded_batch - batch), (0, 0)))

    w_item = w1.dtype.itemsize
    flops = 2 * padded_batch * (n_obs_pad * hidden + hidden * hidden + hidden * n_act_pad)
    bytes_accessed = (
        padded_batch * n_obs_pad * x.dtype.itemsize                             # x (f32, cast in-kernel)
        + (n_obs_pad * hidden + hidden * hidden + hidden * n_act_pad) * w_item  # weights
        + (2 * hidden + n_act_pad) * 4                                          # biases (f32)
        + padded_batch * n_actions * 4                                          # narrow f32 output
    )

    out = pl.pallas_call(
        functools.partial(_dqn_kernel, n_actions=n_actions),
        out_shape=jax.ShapeDtypeStruct((padded_batch, n_actions), jnp.float32),
        grid=(n_tiles,),
        in_specs=[
            pl.BlockSpec((tb, n_obs_pad), lambda i: (i, 0)),       # x tile (pipelined)
            pl.BlockSpec((n_obs_pad, hidden), lambda i: (0, 0)),   # w1 (resident)
            pl.BlockSpec((1, hidden), lambda i: (0, 0)),           # b1
            pl.BlockSpec((hidden, hidden), lambda i: (0, 0)),      # w2
            pl.BlockSpec((1, hidden), lambda i: (0, 0)),           # b2
            pl.BlockSpec((hidden, n_act_pad), lambda i: (0, 0)),   # w3 (lane-padded for MXU)
            pl.BlockSpec((1, n_act_pad), lambda i: (0, 0)),        # b3
        ],
        # Narrow output: last dim equals the full array dim (n_actions), so
        # the (8,128) BlockSpec rule is satisfied and HBM writes shrink ~16x.
        out_specs=pl.BlockSpec((tb, n_actions), lambda i: (i, 0)),
        compiler_params=pltpu.CompilerParams(
            dimension_semantics=("parallel",),   # shard batch tiles over v7x's 2 TCs
            vmem_limit_bytes=32 << 20,           # conservative for v7x's 64 MiB VMEM
        ),
        cost_estimate=pl.CostEstimate(
            flops=flops, transcendentals=0, bytes_accessed=bytes_accessed),
    )(x, w1, b1, w2, b2, w3, b3)

    return out if padded_batch == batch else out[:batch]


def init_params(key, n_observations, n_actions, hidden=256):
    """Deterministic init mimicking nn.Linear's U(-1/sqrt(fan_in), 1/sqrt(fan_in)).
    Weights stored [in, out] (transposed vs PyTorch) so forward is y = x @ W + b."""
    ks = jax.random.split(key, 6)

    def lin(kw, kb, fan_in, fan_out):
        bound = 1.0 / math.sqrt(fan_in)
        w = jax.random.uniform(kw, (fan_in, fan_out), jnp.float32, -bound, bound)
        b = jax.random.uniform(kb, (1, fan_out), jnp.float32, -bound, bound)
        return w, b

    w1, b1 = lin(ks[0], ks[1], n_observations, hidden)
    w2, b2 = lin(ks[2], ks[3], hidden, hidden)
    w3, b3 = lin(ks[4], ks[5], hidden, n_actions)
    return {"w1": w1, "b1": b1, "w2": w2, "b2": b2, "w3": w3, "b3": b3}


def dqn_reference(x, p, compute_dtype=jnp.float32):
    """Pure-JAX reference with the same operand-dtype / f32-accumulate policy."""
    cd = compute_dtype
    xc = x.astype(cd)
    w1, w2, w3 = (p[k].astype(cd) for k in ("w1", "w2", "w3"))
    b1, b2, b3 = (p[k].astype(jnp.float32) for k in ("b1", "b2", "b3"))
    h1 = jnp.maximum(jnp.dot(xc, w1, preferred_element_type=jnp.float32) + b1, 0.0).astype(cd)
    h2 = jnp.maximum(jnp.dot(h1, w2, preferred_element_type=jnp.float32) + b2, 0.0).astype(cd)
    return jnp.dot(h2, w3, preferred_element_type=jnp.float32) + b3


if __name__ == "__main__":
    n_observations, n_actions = 16, 8
    key = jax.random.PRNGKey(0)
    k_params, k_x1, k_x2 = jax.random.split(key, 3)
    params = init_params(k_params, n_observations, n_actions)

    # 1) Exact nn.Linear semantics: f32 operands, tiny batch (padded to one 8-row tile).
    prepped_f32, na = prepare_params(params, compute_dtype=jnp.float32)
    x_small = jax.random.normal(k_x1, (2, n_observations), dtype=jnp.float32)
    out_f32 = jax.block_until_ready(dqn_forward(x_small, prepped_f32, n_actions=na))
    ref_f32 = dqn_reference(x_small, params, compute_dtype=jnp.float32)
    assert out_f32.shape == (2, n_actions)
    assert jnp.allclose(out_f32, ref_f32, atol=1e-4, rtol=1e-4), "f32 mismatch vs reference"

    # 2) Multi-tile grid + bf16 MXU operands (v6e/v7x fast path); 5 tiles of 8 rows.
    prepped_bf16, na = prepare_params(params, compute_dtype=jnp.bfloat16)
    x_big = jax.random.normal(k_x2, (40, n_observations), dtype=jnp.float32)
    out_bf16 = jax.block_until_ready(
        dqn_forward(x_big, prepped_bf16, n_actions=na, tile_b=8))
    assert out_bf16.shape == (40, n_actions)
    ref_bf16 = dqn_reference(x_big, params, compute_dtype=jnp.bfloat16)
    assert jnp.allclose(out_bf16, ref_bf16, atol=2e-3, rtol=2e-3), "bf16 mismatch vs reference"
    # Sanity: bf16 path stays within bf16 rounding of full-f32 math.
    assert jnp.allclose(out_bf16, dqn_reference(x_big, params), atol=5e-2, rtol=5e-2)

    # 3) Default config: tile auto-derived from batch (>= 2 tiles for v7x megacore).
    out_def = jax.block_until_ready(dqn_forward(x_big, prepped_bf16, n_actions=na))
    assert out_def.shape == (40, n_actions)
    assert jnp.allclose(out_def, ref_bf16, atol=2e-3, rtol=2e-3), "default-tile mismatch"

    print("KERNEL_OK")
</pallas_src>

<mosaic_0001>
module attributes {stable_mosaic.version = 11 : i64} {
  func.func @_dqn_kernel(%arg0: i32, %arg1: memref<8x16xf32, #tpu.memory_space<vmem>>, %arg2: memref<16x256xf32, #tpu.memory_space<vmem>>, %arg3: memref<1x256xf32, #tpu.memory_space<vmem>>, %arg4: memref<256x256xf32, #tpu.memory_space<vmem>>, %arg5: memref<1x256xf32, #tpu.memory_space<vmem>>, %arg6: memref<256x128xf32, #tpu.memory_space<vmem>>, %arg7: memref<1x128xf32, #tpu.memory_space<vmem>>, %arg8: memref<8x8xf32, #tpu.memory_space<vmem>>) attributes {dimension_semantics = [#tpu.dimension_semantics<parallel>], iteration_bounds = array<i64: 1>, scalar_prefetch = 0 : i64, scratch_operands = 0 : i64, tpu.core_type = #tpu.core_type<tc>, window_params = [{transform_indices = @transform_0, window_bounds = array<i64: 8, 16>}, {pipeline_mode = #tpu.pipeline_mode<synchronous>, transform_indices = @transform_1, window_bounds = array<i64: 16, 256>}, {pipeline_mode = #tpu.pipeline_mode<synchronous>, transform_indices = @transform_2, window_bounds = array<i64: 1, 256>}, {pipeline_mode = #tpu.pipeline_mode<synchronous>, transform_indices = @transform_3, window_bounds = array<i64: 256, 256>}, {pipeline_mode = #tpu.pipeline_mode<synchronous>, transform_indices = @transform_4, window_bounds = array<i64: 1, 256>}, {pipeline_mode = #tpu.pipeline_mode<synchronous>, transform_indices = @transform_5, window_bounds = array<i64: 256, 128>}, {pipeline_mode = #tpu.pipeline_mode<synchronous>, transform_indices = @transform_6, window_bounds = array<i64: 1, 128>}, {transform_indices = @transform_7, window_bounds = array<i64: 8, 8>}]} {
    %c0 = arith.constant 0 : index
    %c0_0 = arith.constant 0 : index
    %0 = vector.load %arg1[%c0, %c0_0] : memref<8x16xf32, #tpu.memory_space<vmem>>, vector<8x16xf32>
    %c0_1 = arith.constant 0 : index
    %c0_2 = arith.constant 0 : index
    %1 = vector.load %arg2[%c0_1, %c0_2] : memref<16x256xf32, #tpu.memory_space<vmem>>, vector<16x256xf32>
    %cst = arith.constant dense<0.000000e+00> : vector<8x256xf32>
    %2 = tpu.matmul %0, %1, %cst {dimension_numbers = #tpu.dot_dimension_numbers<[1], [0], [0], [1], [0, 0, 1, 1], [], []>} : vector<8x16xf32>, vector<16x256xf32>, vector<8x256xf32> -> vector<8x256xf32>
    %c0_3 = arith.constant 0 : index
    %c0_4 = arith.constant 0 : index
    %3 = vector.load %arg3[%c0_3, %c0_4] : memref<1x256xf32, #tpu.memory_space<vmem>>, vector<1x256xf32>
    %4 = vector.broadcast %3 : vector<1x256xf32> to vector<8x256xf32>
    %5 = arith.addf %2, %4 : vector<8x256xf32>
    %cst_5 = arith.constant 0.000000e+00 : f32
    %6 = vector.broadcast %cst_5 : f32 to vector<8x256xf32>
    %7 = arith.maximumf %5, %6 : vector<8x256xf32>
    %c0_6 = arith.constant 0 : index
    %c0_7 = arith.constant 0 : index
    %8 = vector.load %arg4[%c0_6, %c0_7] : memref<256x256xf32, #tpu.memory_space<vmem>>, vector<256x256xf32>
    %cst_8 = arith.constant dense<0.000000e+00> : vector<8x256xf32>
    %9 = tpu.matmul %7, %8, %cst_8 {dimension_numbers = #tpu.dot_dimension_numbers<[1], [0], [0], [1], [0, 0, 1, 1], [], []>} : vector<8x256xf32>, vector<256x256xf32>, vector<8x256xf32> -> vector<8x256xf32>
    %c0_9 = arith.constant 0 : index
    %c0_10 = arith.constant 0 : index
    %10 = vector.load %arg5[%c0_9, %c0_10] : memref<1x256xf32, #tpu.memory_space<vmem>>, vector<1x256xf32>
    %11 = vector.broadcast %10 : vector<1x256xf32> to vector<8x256xf32>
    %12 = arith.addf %9, %11 : vector<8x256xf32>
    %cst_11 = arith.constant 0.000000e+00 : f32
    %13 = vector.broadcast %cst_11 : f32 to vector<8x256xf32>
    %14 = arith.maximumf %12, %13 : vector<8x256xf32>
    %c0_12 = arith.constant 0 : index
    %c0_13 = arith.constant 0 : index
    %15 = vector.load %arg6[%c0_12, %c0_13] : memref<256x128xf32, #tpu.memory_space<vmem>>, vector<256x128xf32>
    %cst_14 = arith.constant dense<0.000000e+00> : vector<8x128xf32>
    %16 = tpu.matmul %14, %15, %cst_14 {dimension_numbers = #tpu.dot_dimension_numbers<[1], [0], [0], [1], [0, 0, 1, 1], [], []>} : vector<8x256xf32>, vector<256x128xf32>, vector<8x128xf32> -> vector<8x128xf32>
    %c0_15 = arith.constant 0 : index
    %c0_16 = arith.constant 0 : index
    %17 = vector.load %arg7[%c0_15, %c0_16] : memref<1x128xf32, #tpu.memory_space<vmem>>, vector<1x128xf32>
    %18 = vector.broadcast %17 : vector<1x128xf32> to vector<8x128xf32>
    %19 = arith.addf %16, %18 : vector<8x128xf32>
    %20 = vector.extract_strided_slice %19 {offsets = [0, 0], sizes = [8, 8], strides = [1, 1]} : vector<8x128xf32> to vector<8x8xf32>
    %c0_17 = arith.constant 0 : index
    %c0_18 = arith.constant 0 : index
    %21 = vector.load %arg8[%c0_17, %c0_18] : memref<8x8xf32, #tpu.memory_space<vmem>>, vector<8x8xf32>
    tpu.vector_store %arg8[%c0_17, %c0_18], %20 {strides = array<i32>} : memref<8x8xf32, #tpu.memory_space<vmem>>, vector<8x8xf32>,
    return
  }
  func.func @transform_0(%arg0: i32) -> (i32, i32) {
    %c0_i32 = arith.constant 0 : i32
    %c0_i32_0 = arith.constant 0 : i32
    return %arg0, %c0_i32 : i32, i32
  }
  func.func @transform_1(%arg0: i32) -> (i32, i32) {
    %c0_i32 = arith.constant 0 : i32
    %c0_i32_0 = arith.constant 0 : i32
    %c0_i32_1 = arith.constant 0 : i32
    return %c0_i32, %c0_i32_0 : i32, i32
  }
  func.func @transform_2(%arg0: i32) -> (i32, i32) {
    %c0_i32 = arith.constant 0 : i32
    %c0_i32_0 = arith.constant 0 : i32
    %c0_i32_1 = arith.constant 0 : i32
    return %c0_i32, %c0_i32_0 : i32, i32
  }
  func.func @transform_3(%arg0: i32) -> (i32, i32) {
    %c0_i32 = arith.constant 0 : i32
    %c0_i32_0 = arith.constant 0 : i32
    %c0_i32_1 = arith.constant 0 : i32
    return %c0_i32, %c0_i32_0 : i32, i32
  }
  func.func @transform_4(%arg0: i32) -> (i32, i32) {
    %c0_i32 = arith.constant 0 : i32
    %c0_i32_0 = arith.constant 0 : i32
    %c0_i32_1 = arith.constant 0 : i32
    return %c0_i32, %c0_i32_0 : i32, i32
  }
  func.func @transform_5(%arg0: i32) -> (i32, i32) {
    %c0_i32 = arith.constant 0 : i32
    %c0_i32_0 = arith.constant 0 : i32
    %c0_i32_1 = arith.constant 0 : i32
    return %c0_i32, %c0_i32_0 : i32, i32
  }
  func.func @transform_6(%arg0: i32) -> (i32, i32) {
    %c0_i32 = arith.constant 0 : i32
    %c0_i32_0 = arith.constant 0 : i32
    %c0_i32_1 = arith.constant 0 : i32
    return %c0_i32, %c0_i32_0 : i32, i32
  }
  func.func @transform_7(%arg0: i32) -> (i32, i32) {
    %c0_i32 = arith.constant 0 : i32
    %c0_i32_0 = arith.constant 0 : i32
    return %arg0, %c0_i32 : i32, i32
  }
}

</mosaic_0001>

<bundles_post_ra>
// kernel: dqn_forward.1
= control target key start
LH: loop header
LB: loop body
LE: loop exit
PB: predicated region body
PF: predicated region fallthrough
CT: control target
= control target key end

     0   :  { %12 = vsyncpa [#allocation3], 0  ;;  %s748_s0 = inlined_call_operand.vmem [shape: f32[8,16], index: 0, kind: input, shape index: {}]   ;;  %s749_s1 = inlined_call_operand.hbm [shape: f32[16,256], index: 1, kind: input, shape index: {}]   ;;  %s750_s2 = inlined_call_operand.vmem [shape: f32[1,256], index: 2, kind: input, shape index: {}]   ;;  %s751_s3 = inlined_call_operand.hbm [shape: f32[256,256], index: 3, kind: input, shape index: {}]   ;;  %s752_s4 = inlined_call_operand.vmem [shape: f32[1,256], index: 4, kind: input, shape index: {}]   ;;  %s753_s5 = inlined_call_operand.hbm [shape: f32[256,128], index: 5, kind: input, shape index: {}]   ;;  %s754_s6 = inlined_call_operand.vmem [shape: f32[1,128], index: 6, kind: input, shape index: {}]   ;;  %s755_s7 = inlined_call_operand.vmem [shape: f32[8,8], index: 7, kind: output, shape index: {}]  }
   0x1   :  { %13 = vsyncpa [#allocation5], 0  ;;  %s642_s24 = smov [#allocation4]   ;;  %s643_s26 = smov [#allocation2]  }
   0x2   :  { %s35_s25 = sshll.u32 %s642_s24, 4  ;;  %s21_s27 = sshll.u32 %s643_s26, 4  ;;  %s36_s25 = int_to_ptr.vmem [resolvable:$true] %s35_s25  ;;  %s690_s27 = int_to_ptr.vmem [resolvable:$true] %s21_s27 }
   0x3   :  { %s572_s30 = scalar_lea.hbm %s751_s3, 8192 }
   0x4   :  { %p573_p0 = scmp.ne.s32.totalorder %s751_s3, %s572_s30  ;;  %p576_p1 = scmp.lt.u32.totalorder %s572_s30, %s751_s3 }
   0x6   :  { %p578_p2 = pnand %p576_p1, %p573_p0 }
   0x8   :  { %581 = shalt.err (!%p578_p2)
}
   0x9   :  { %s582_s12 = scalar_lea.vmem %s36_s25, 8192  ;;  %p587_p4 = scmp.lt.s32.totalorder %s36_s25, %s36_s25 }
   0xa   :  { %p583_p3 = scmp.ne.s32.totalorder %s36_s25, %s582_s12  ;;  %p588_p5 = scmp.lt.s32.totalorder %s582_s12, %s582_s12 }
   0xc   :  { %p589_p6 = por %p588_p5, %p587_p4 }
   0xe   :  { %p590_p7 = pnand %p589_p6, %p583_p3 }
  0x10   :  { %593 = shalt.err (!%p590_p7)
}
  0x11   :  { %s644_s13 = smov 256   ;;  %s645_s14 = smov 16  }
  0x12   :  { %41 = dma.hbm_to_vmem [thread:$0]  %s751_s3, 8192, %s36_s25, [#allocation5], %s644_s13, %s644_s13, %s645_s14  }
  0x13   :  { %s594_s19 = scalar_lea.hbm %s749_s1, 512 }
  0x14   :  { %p595_p8 = scmp.ne.s32.totalorder %s749_s1, %s594_s19  ;;  %p598_p9 = scmp.lt.u32.totalorder %s594_s19, %s749_s1 }
  0x16   :  { %p600_p10 = pnand %p598_p9, %p595_p8 }
  0x18   :  { %603 = shalt.err (!%p600_p10)
}
  0x19   :  { %s604_s24 = scalar_lea.vmem %s690_s27, 512  ;;  %p609_p12 = scmp.lt.s32.totalorder %s690_s27, %s690_s27 }
  0x1a   :  { %p605_p11 = scmp.ne.s32.totalorder %s690_s27, %s604_s24  ;;  %p610_p13 = scmp.lt.s32.totalorder %s604_s24, %s604_s24 }
  0x1c   :  { %p611_p0 = por %p610_p13, %p609_p12 }
  0x1e   :  { %p612_p1 = pnand %p611_p0, %p605_p11 }
  0x20   :  { %615 = shalt.err (!%p612_p1)
}
  0x21   :  { %27 = dma.hbm_to_vmem [thread:$0]  %s749_s1, 512, %s690_s27, [#allocation3], %s644_s13, %s644_s13, %s645_s14  }
  0x22   :  { %s646_s26 = smov [#allocation6]   ;;  %s616_s8 = scalar_lea.hbm %s753_s5, 4096 }
  0x23   :  { %s49_s28 = sshll.u32 %s646_s26, 4  ;;  %p617_p2 = scmp.ne.s32.totalorder %s753_s5, %s616_s8  ;;  %s50_s28 = int_to_ptr.vmem [resolvable:$true] %s49_s28 }
  0x24   :  { %p620_p3 = scmp.lt.u32.totalorder %s616_s8, %s753_s5 }
  0x26   :  { %p622_p4 = pnand %p620_p3, %p617_p2 }
  0x28   :  { %625 = shalt.err (!%p622_p4)
}
  0x29   :  { %s626_s15 = scalar_lea.vmem %s50_s28, 4096  ;;  %p631_p6 = scmp.lt.s32.totalorder %s50_s28, %s50_s28 }
  0x2a   :  { %p627_p5 = scmp.ne.s32.totalorder %s50_s28, %s626_s15  ;;  %p632_p7 = scmp.lt.s32.totalorder %s626_s15, %s626_s15 }
  0x2c   :  { %p633_p8 = por %p632_p7, %p631_p6 }
  0x2e   :  { %p634_p9 = pnand %p633_p8, %p627_p5 }
  0x30   :  { %637 = shalt.err (!%p634_p9)
}
  0x31   :  { %s647_s1 = smov 128   ;;  %s648_s27 = smov 8  }
  0x32   :  { %55 = dma.hbm_to_vmem [thread:$0]  %s753_s5, 4096, %s50_s28, [#allocation5], %s647_s1, %s647_s1, %s648_s27  }
  0x33   :  { %638 = dma.done.wait [#allocation3], 512  }
  0x34   :  { %639 = vsyncadd [#allocation3], 4294966784 }
  0x35   :  { %640 = dma.done.wait [#allocation5], 12288  }
  0x36   :  { %641 = vsyncadd [#allocation5], 4294955008  ;;  %v649_v0 = vmov 0.0   ;;  %v69_v1 = vld [vmem:[#allocation2 + $0x8] sm:$0xff]  ;;  %v71_v2 = vld [vmem:[#allocation2 + $0x18] sm:$0xff]  ;;  %vm84_vm0 = vcmask 130048  }
  0x37   :  { %152 = vmatprep.mubr.f32.mxu0 %v649_v0  ;;  %v68_v3 = vld [vmem:[#allocation2] sm:$0xff]  ;;  %v464_v4 = vpack.c.bf16 %v71_v2, %v69_v1  ;;  %v70_v5 = vld [vmem:[#allocation2 + $0x10] sm:$0xff]  ;;  %v162_v6 = vld [vmem:[#allocation4 + $0x8] sm:$0xff]  ;;  %vm419_vm1 = vcmask 64512  }
  0x38   :  { %v466_v7 = vpack.c.bf16 %v70_v5, %v68_v3  ;;  %v67_v8 = vld [vmem:[%s748_s0] sm:$0xff]  ;;  %v164_v9 = vld [vmem:[#allocation4 + $0x18] sm:$0xff]  ;;  %v163_v11 = vld [vmem:[#allocation4 + $0x10] sm:$0xff] }
  0x39   :  { %v161_v10 = vld [vmem:[#allocation4] sm:$0xff]  ;;  %465 = vmatprep.subr.bf16.mxu0 %v464_v4  ;;  %v468_v12 = vpack.c.bf16 %v164_v9, %v162_v6  ;;  %v166_v14 = vld [vmem:[#allocation4 + $0x28] sm:$0xff]  ;;  %v168_v15 = vld [vmem:[#allocation4 + $0x38] sm:$0xff] }
  0x3a   :  { %v470_v13 = vpack.c.bf16 %v163_v11, %v161_v10  ;;  %v165_v16 = vld [vmem:[#allocation4 + $0x20] sm:$0xff]  ;;  %467 = vmatpush1.bf16.msra.mxu0 %v466_v7  ;;  %v472_v17 = vpack.c.bf16 %v168_v15, %v166_v14  ;;  %v167_v18 = vld [vmem:[#allocation4 + $0x30] sm:$0xff]  ;;  %v170_v19 = vld [vmem:[#allocation4 + $0x48] sm:$0xff] }
  0x3b   :  { %v172_v20 = vld [vmem:[#allocation4 + $0x58] sm:$0xff]  ;;  %469 = vmatprep.subr.bf16.mxu1 %v468_v12  ;;  %v474_v21 = vpack.c.bf16 %v167_v18, %v165_v16  ;;  %v169_v23 = vld [vmem:[#allocation4 + $0x40] sm:$0xff]  ;;  %v171_v24 = vld [vmem:[#allocation4 + $0x50] sm:$0xff] }
  0x3c   :  { %471 = vmatpush1.bf16.msra.mxu1 %v470_v13  ;;  %v476_v22 = vpack.c.bf16 %v172_v20, %v170_v19  ;;  %v174_v25 = vld [vmem:[#allocation4 + $0x68] sm:$0xff]  ;;  %v176_v26 = vld [vmem:[#allocation4 + $0x78] sm:$0xff]  ;;  %v478_v27 = vpack.c.bf16 %v171_v24, %v169_v23  ;;  %v173_v29 = vld [vmem:[#allocation4 + $0x60] sm:$0xff] }
  0x3d   :  { %427 = vmatmul.mubr.msk.f32.vlgmr.msra.gmra.mrb[0].mxu0 %vm84_vm0, %v67_v8  ;;  %473 = vmatprep.subr.bf16.mxu1 %v472_v17  ;;  %v480_v28 = vpack.c.bf16 %v176_v26, %v174_v25  ;;  %v175_v30 = vld [vmem:[#allocation4 + $0x70] sm:$0xff]  ;;  %v178_v31 = vld [vmem:[#allocation4 + $0x88] sm:$0xff]  ;;  %v180_v32 = vld [vmem:[#allocation4 + $0x98] sm:$0xff] }
  0x3e   :  { %v482_v33 = vpack.c.bf16 %v175_v30, %v173_v29  ;;  %v484_v34 = vpack.c.bf16 %v180_v32, %v178_v31  ;;  %v177_v35 = vld [vmem:[#allocation4 + $0x80] sm:$0xff]  ;;  %v179_v36 = vld [vmem:[#allocation4 + $0x90] sm:$0xff]  ;;  %v182_v37 = vld [vmem:[#allocation4 + $0xa8] sm:$0xff] }
  0x3f   :  { %v184_v38 = vld [vmem:[#allocation4 + $0xb8] sm:$0xff]  ;;  %v486_v39 = vpack.c.bf16 %v179_v36, %v177_v35  ;;  %v181_v41 = vld [vmem:[#allocation4 + $0xa0] sm:$0xff]  ;;  %v183_v42 = vld [vmem:[#allocation4 + $0xb0] sm:$0xff] }
  0x40   :  { %475 = vmatpush1.bf16.msra.mxu1 %v474_v21  ;;  %v488_v40 = vpack.c.bf16 %v184_v38, %v182_v37  ;;  %v186_v43 = vld [vmem:[#allocation4 + $0xc8] sm:$0xff]  ;;  %v188_v44 = vld [vmem:[#allocation4 + $0xd8] sm:$0xff]  ;;  %v490_v45 = vpack.c.bf16 %v183_v42, %v181_v41  ;;  %v185_v47 = vld [vmem:[#allocation4 + $0xc0] sm:$0xff] }
  0x41   :  { %477 = vmatprep.subr.bf16.mxu1 %v476_v22  ;;  %v492_v46 = vpack.c.bf16 %v188_v44, %v186_v43  ;;  %v187_v48 = vld [vmem:[#allocation4 + $0xd0] sm:$0xff]  ;;  %v190_v49 = vld [vmem:[#allocation4 + $0xe8] sm:$0xff]  ;;  %v192_v50 = vld [vmem:[#allocation4 + $0xf8] sm:$0xff] }
  0x42   :  { %v494_v51 = vpack.c.bf16 %v187_v48, %v185_v47  ;;  %v496_v52 = vpack.c.bf16 %v192_v50, %v190_v49  ;;  %v189_v53 = vld [vmem:[#allocation4 + $0xe0] sm:$0xff]  ;;  %v191_v54 = vld [vmem:[#allocation4 + $0xf0] sm:$0xff]  ;;  %v194_v55 = vld [vmem:[#allocation4 + $0x108] sm:$0xff] }
  0x43   :  { %v196_v56 = vld [vmem:[#allocation4 + $0x118] sm:$0xff]  ;;  %v498_v57 = vpack.c.bf16 %v191_v54, %v189_v53  ;;  %v193_v59 = vld [vmem:[#allocation4 + $0x100] sm:$0xff]  ;;  %v195_v60 = vld [vmem:[#allocation4 + $0x110] sm:$0xff] }
  0x44   :  { %479 = vmatpush1.bf16.msra.mxu1 %v478_v27  ;;  %v500_v58 = vpack.c.bf16 %v196_v56, %v194_v55  ;;  %v198_v61 = vld [vmem:[#allocation4 + $0x128] sm:$0xff]  ;;  %v200_v62 = vld [vmem:[#allocation4 + $0x138] sm:$0xff]  ;;  %v502_v63 = vpack.c.bf16 %v195_v60, %v193_v59  ;;  %v197_v1 = vld [vmem:[#allocation4 + $0x120] sm:$0xff] }
  0x45   :  { %481 = vmatprep.subr.bf16.mxu1 %v480_v28  ;;  %v504_v0 = vpack.c.bf16 %v200_v62, %v198_v61  ;;  %v199_v2 = vld [vmem:[#allocation4 + $0x130] sm:$0xff]  ;;  %v202_v3 = vld [vmem:[#allocation4 + $0x148] sm:$0xff]  ;;  %v204_v4 = vld [vmem:[#allocation4 + $0x158] sm:$0xff] }
  0x46   :  { %v506_v5 = vpack.c.bf16 %v199_v2, %v197_v1  ;;  %v508_v6 = vpack.c.bf16 %v204_v4, %v202_v3  ;;  %v201_v7 = vld [vmem:[#allocation4 + $0x140] sm:$0xff]  ;;  %v203_v8 = vld [vmem:[#allocation4 + $0x150] sm:$0xff]  ;;  %v206_v9 = vld [vmem:[#allocation4 + $0x168] sm:$0xff] }
  0x47   :  { %v208_v10 = vld [vmem:[#allocation4 + $0x178] sm:$0xff]  ;;  %v510_v11 = vpack.c.bf16 %v203_v8, %v201_v7  ;;  %v205_v13 = vld [vmem:[#allocation4 + $0x160] sm:$0xff]  ;;  %v207_v14 = vld [vmem:[#allocation4 + $0x170] sm:$0xff] }
  0x48   :  { %483 = vmatpush1.bf16.msra.mxu1 %v482_v33  ;;  %v512_v12 = vpack.c.bf16 %v208_v10, %v206_v9  ;;  %v210_v15 = vld [vmem:[#allocation4 + $0x188] sm:$0xff]  ;;  %v212_v16 = vld [vmem:[#allocation4 + $0x198] sm:$0xff]  ;;  %v514_v17 = vpack.c.bf16 %v207_v14, %v205_v13  ;;  %v209_v19 = vld [vmem:[#allocation4 + $0x180] sm:$0xff] }
  0x49   :  { %485 = vmatprep.subr.bf16.mxu1 %v484_v34  ;;  %v516_v18 = vpack.c.bf16 %v212_v16, %v210_v15  ;;  %v211_v20 = vld [vmem:[#allocation4 + $0x190] sm:$0xff]  ;;  %v214_v21 = vld [vmem:[#allocation4 + $0x1a8] sm:$0xff]  ;;  %v216_v22 = vld [vmem:[#allocation4 + $0x1b8] sm:$0xff]  ;;  %v74_v15 = vlaneseq }
  0x4a   :  { %v518_v23 = vpack.c.bf16 %v211_v20, %v209_v19  ;;  %v520_v24 = vpack.c.bf16 %v216_v22, %v214_v21  ;;  %v213_v25 = vld [vmem:[#allocation4 + $0x1a0] sm:$0xff]  ;;  %v215_v26 = vld [vmem:[#allocation4 + $0x1b0] sm:$0xff]  ;;  %v218_v27 = vld [vmem:[#allocation4 + $0x1c8] sm:$0xff] }
  0x4b   :  { %v220_v28 = vld [vmem:[#allocation4 + $0x1d8] sm:$0xff]  ;;  %v522_v29 = vpack.c.bf16 %v215_v26, %v213_v25  ;;  %v217_v31 = vld [vmem:[#allocation4 + $0x1c0] sm:$0xff]  ;;  %v219_v32 = vld [vmem:[#allocation4 + $0x1d0] sm:$0xff]  ;;  %v75_v16 = vshrl.u32 %v74_v15, 7 }
  0x4c   :  { %487 = vmatpush1.bf16.msra.mxu1 %v486_v39  ;;  %v524_v30 = vpack.c.bf16 %v220_v28, %v218_v27  ;;  %v526_v33 = vpack.c.bf16 %v219_v32, %v217_v31  ;;  %v222_v34 = vld [vmem:[#allocation4 + $0x1e8] sm:$0xff]  ;;  %v224_v35 = vld [vmem:[#allocation4 + $0x1f8] sm:$0xff]  ;;  %v221_v37 = vld [vmem:[#allocation4 + $0x1e0] sm:$0xff] }
  0x4d   :  { %489 = vmatprep.subr.bf16.mxu1 %v488_v40  ;;  %v528_v36 = vpack.c.bf16 %v224_v35, %v222_v34  ;;  %v223_v38 = vld [vmem:[#allocation4 + $0x1f0] sm:$0xff]  ;;  %v326_v40 = vld [vmem:[#allocation6 + $0x80] sm:$0xff]  ;;  %v327_v41 = vld [vmem:[#allocation6 + $0x88] sm:$0xff]  ;;  %v80_v19 = vsub.s32 1, %v75_v16 }
  0x4e   :  { %v530_v39 = vpack.c.bf16 %v223_v38, %v221_v37  ;;  %v310_v42 = vld [vmem:[#allocation6] sm:$0xff]  ;;  %v532_v43 = vpack.c.bf16 %v327_v41, %v326_v40  ;;  %v311_v44 = vld [vmem:[#allocation6 + $0x8] sm:$0xff]  ;;  %v312_v49 = vld [vmem:[#allocation6 + $0x10] sm:$0xff] }
  0x4f   :  { %v534_v47 = vpack.c.bf16 %v311_v44, %v310_v42  ;;  %v313_v50 = vld [vmem:[#allocation6 + $0x18] sm:$0xff]  ;;  %v314_v55 = vld [vmem:[#allocation6 + $0x20] sm:$0xff]  ;;  %v315_v56 = vld [vmem:[#allocation6 + $0x28] sm:$0xff] }
  0x50   :  { %491 = vmatpush1.bf16.msra.mxu1 %v490_v45  ;;  %v328_v45 = vld [vmem:[#allocation6 + $0x90] sm:$0xff]  ;;  %533 = vmatprep.subr.bf16.mxu0 %v532_v43  ;;  %v538_v53 = vpack.c.bf16 %v313_v50, %v312_v49  ;;  %v542_v59 = vpack.c.bf16 %v315_v56, %v314_v55  ;;  %v317_v62 = vld [vmem:[#allocation6 + $0x38] sm:$0xff]  ;;  %v318_v3 = vld [vmem:[#allocation6 + $0x40] sm:$0xff] }
  0x51   :  { %493 = vmatprep.subr.bf16.mxu1 %v492_v46  ;;  %v329_v46 = vld [vmem:[#allocation6 + $0x98] sm:$0xff]  ;;  %535 = vmatpush3.bf16.msra.mxu0 %v534_v47  ;;  %v316_v61 = vld [vmem:[#allocation6 + $0x30] sm:$0xff]  ;;  %v319_v4 = vld [vmem:[#allocation6 + $0x48] sm:$0xff] }
  0x52   :  { %v536_v48 = vpack.c.bf16 %v329_v46, %v328_v45  ;;  %v546_v1 = vpack.c.bf16 %v317_v62, %v316_v61  ;;  %v550_v7 = vpack.c.bf16 %v319_v4, %v318_v3  ;;  %v320_v9 = vld [vmem:[#allocation6 + $0x50] sm:$0xff]  ;;  %v321_v10 = vld [vmem:[#allocation6 + $0x58] sm:$0xff]  ;;  %v322_v28 = vld [vmem:[#allocation6 + $0x60] sm:$0xff] }
  0x53   :  { %v554_v13 = vpack.c.bf16 %v321_v10, %v320_v9  ;;  %v340_v31 = vld [vmem:[#allocation6 + $0xf0] sm:$0xff]  ;;  %v341_v32 = vld [vmem:[#allocation6 + $0xf8] sm:$0xff]  ;;  %v225_v37 = vld [vmem:[%s752_s4] sm:$0x3] }
  0x54   :  { %495 = vmatpush1.bf16.msra.mxu1 %v494_v51  ;;  %v330_v51 = vld [vmem:[#allocation6 + $0xa0] sm:$0xff]  ;;  %537 = vmatprep.subr.bf16.mxu0 %v536_v48  ;;  %v324_v34 = vld [vmem:[#allocation6 + $0x70] sm:$0xff]  ;;  %v325_v35 = vld [vmem:[#allocation6 + $0x78] sm:$0xff] }
  0x55   :  { %497 = vmatprep.subr.bf16.mxu1 %v496_v52  ;;  %v331_v52 = vld [vmem:[#allocation6 + $0xa8] sm:$0xff]  ;;  %539 = vmatpush3.bf16.msra.mxu0 %v538_v53  ;;  %v428_v47 = vld [vmem:[%s754_s6] ss:$0 sm:$0xff] }
  0x56   :  { %v540_v54 = vpack.c.bf16 %v331_v52, %v330_v51 }
  0x58   :  { %499 = vmatpush1.bf16.msra.mxu1 %v498_v57  ;;  %v332_v57 = vld [vmem:[#allocation6 + $0xb0] sm:$0xff]  ;;  %541 = vmatprep.subr.bf16.mxu0 %v540_v54 }
  0x59   :  { %501 = vmatprep.subr.bf16.mxu1 %v500_v58  ;;  %v333_v58 = vld [vmem:[#allocation6 + $0xb8] sm:$0xff]  ;;  %543 = vmatpush3.bf16.msra.mxu0 %v542_v59 }
  0x5a   :  { %v544_v60 = vpack.c.bf16 %v333_v58, %v332_v57 }
  0x5c   :  { %503 = vmatpush1.bf16.msra.mxu1 %v502_v63  ;;  %v334_v63 = vld [vmem:[#allocation6 + $0xc0] sm:$0xff]  ;;  %545 = vmatprep.subr.bf16.mxu0 %v544_v60 }
  0x5d   :  { %505 = vmatprep.subr.bf16.mxu1 %v504_v0  ;;  %v335_v0 = vld [vmem:[#allocation6 + $0xc8] sm:$0xff]  ;;  %547 = vmatpush3.bf16.msra.mxu0 %v546_v1 }
  0x5e   :  { %v548_v2 = vpack.c.bf16 %v335_v0, %v334_v63 }
  0x60   :  { %507 = vmatpush1.bf16.msra.mxu1 %v506_v5  ;;  %v336_v5 = vld [vmem:[#allocation6 + $0xd0] sm:$0xff]  ;;  %549 = vmatprep.subr.bf16.mxu0 %v548_v2 }
  0x61   :  { %509 = vmatprep.subr.bf16.mxu1 %v508_v6  ;;  %v337_v6 = vld [vmem:[#allocation6 + $0xd8] sm:$0xff]  ;;  %551 = vmatpush3.bf16.msra.mxu0 %v550_v7 }
  0x62   :  { %v552_v8 = vpack.c.bf16 %v337_v6, %v336_v5 }
  0x64   :  { %511 = vmatpush1.bf16.msra.mxu1 %v510_v11  ;;  %v338_v11 = vld [vmem:[#allocation6 + $0xe0] sm:$0xff]  ;;  %553 = vmatprep.subr.bf16.mxu0 %v552_v8 }
  0x65   :  { %513 = vmatprep.subr.bf16.mxu1 %v512_v12  ;;  %v339_v12 = vld [vmem:[#allocation6 + $0xe8] sm:$0xff]  ;;  %555 = vmatpush3.bf16.msra.mxu0 %v554_v13 }
  0x66   :  { %v556_v14 = vpack.c.bf16 %v339_v12, %v338_v11 }
  0x68   :  { %515 = vmatpush1.bf16.msra.mxu1 %v514_v17  ;;  %557 = vmatprep.subr.bf16.mxu0 %v556_v14  ;;  %v76_v17 = vsub.s32 0, %v75_v16 }
  0x69   :  { %517 = vmatprep.subr.bf16.mxu1 %v516_v18  ;;  %v72_v18 = vld [vmem:[%s750_s2] sm:$0x3] }
  0x6a   :  { %v77_v20 = vrot.slane %v72_v18, %v76_v17  ;;  %v81_v21 = vrot.slane %v72_v18, %v80_v19  ;;  %v230_v38 = vrot.slane %v225_v37, %v76_v17 }
  0x6c   :  { %519 = vmatpush1.bf16.msra.mxu1 %v518_v23 }
  0x6d   :  { %521 = vmatprep.subr.bf16.mxu1 %v520_v24 }
  0x70   :  { %523 = vmatpush1.bf16.msra.mxu1 %v522_v29  ;;  %v323_v29 = vld [vmem:[#allocation6 + $0x68] sm:$0xff] }
  0x71   :  { %525 = vmatprep.subr.bf16.mxu1 %v524_v30  ;;  %v558_v30 = vpack.c.bf16 %v323_v29, %v322_v28 }
  0x73   :  { %559 = vmatpush3.bf16.msra.mxu0 %v558_v30 }
  0x74   :  { %527 = vmatpush1.bf16.msra.mxu1 %v526_v33  ;;  %v560_v33 = vpack.c.bf16 %v341_v32, %v340_v31 }
  0x75   :  { %529 = vmatprep.subr.bf16.mxu1 %v528_v36  ;;  %v562_v36 = vpack.c.bf16 %v325_v35, %v324_v34 }
  0x76   :  { %561 = vmatprep.subr.bf16.mxu0 %v560_v33 }
  0x77   :  { %563 = vmatpush3.bf16.msra.mxu0 %v562_v36 }
  0x78   :  { %531 = vmatpush1.bf16.msra.mxu1 %v530_v39  ;;  %v234_v39 = vrot.slane %v225_v37, %v80_v19 }
 0x110   :  { %v154_v22 = vpop.f32.mrb[0].mxu0 }
 0x111   :  { %v155_v23 = vadd.f32 %v154_v22, %v77_v20  ;;  %v156_v24 = vpop.f32.mrb[1].mxu0 }
 0x112   :  { %v157_v25 = vadd.f32 %v156_v24, %v81_v21 }
 0x113   :  { %v159_v27 = vmax.f32 %v155_v23, 0.0 }
 0x114   :  { %v160_v26 = vmax.f32 %v157_v25, 0.0 }
 0x116   :  { %301 = vmatprep.mubr.f32.mxu1 %v160_v26 }
 0x117   :  { %302 = vmatmul.mubr.f32.vlgmr.msra.gmra.mrb[0].mxu1 %v159_v27 }
 0x1ea   :  { %v303_v40 = vpop.f32.mrb[0].mxu1 }
 0x1eb   :  { %v304_v41 = vadd.f32 %v303_v40, %v230_v38  ;;  %v305_v42 = vpop.f32.mrb[1].mxu1 }
 0x1ec   :  { %v306_v43 = vadd.f32 %v305_v42, %v234_v39 }
 0x1ed   :  { %v308_v45 = vmax.f32 %v304_v41, 0.0 }
 0x1ee   :  { %v309_v44 = vmax.f32 %v306_v43, 0.0 }
 0x1f0   :  { %413 = vmatprep.mubr.f32.mxu0 %v309_v44 }
 0x1f1   :  { %414 = vmatmul.mubr.f32.vlgmr.msra.gmra.mrb[2].mxu0 %v308_v45 }
 0x2c4   :  { %v461_v46 = vpop.f32.mrb[2].mxu0 }
 0x2c5   :  { %v462_v48 = vpop.f32.mrb[3].mxu0 }
 0x2c6   :  { %v463_v49 = vadd.f32 %v462_v48, %v461_v46 }
 0x2c8   :  { %v416_v50 = vadd.f32 %v463_v49, %v428_v47 }
 0x2ca   :  { %420 = vst.msk [vmem:[%s755_s7] sm:$0xff] %vm419_vm1, %v416_v50 }
 0x2cb   :  { %425 = vsyncpa [#allocation3], 1 }
 0x2cc   :  { %426 = vsyncpa [#allocation5], 1 }

</bundles_post_ra>
